<compile_context>
chip_gen: v7x
topology: tpu7x:2x2x1
jax: 0.10.0
libtpu: 0.0.40
codegen_flags: <defaults>
</compile_context>

<pallas_src>
import jax
import jax.numpy as jnp
from jax.experimental import pallas as pl
from jax.experimental.pallas import tpu as pltpu


def _round_up(x, m):
    return -(-x // m) * m


def _num_tensorcores():
    # v7x exposes 2 TensorCores per chip that split a "parallel" grid axis;
    # v5e / v6e have a single TensorCore per chip.
    try:
        kind = jax.devices()[0].device_kind.lower()
    except Exception:
        return 1
    return 2 if "v7" in kind else 1


def rbm_forward_kernel(x_ref, w_ref, b_ref, o_ref):
    # x_ref: (tb, V) f32 visible units, w_ref: (V, H) bf16, b_ref: (1, H) f32.
    xb = x_ref[...].astype(jnp.bfloat16)                             # in-kernel cast
    z = jnp.dot(xb, w_ref[...], preferred_element_type=jnp.float32)  # MXU, f32 acc
    z = z + b_ref[...]                                               # broadcast (1,H)
    # sigmoid(z) = 0.5 * tanh(0.5*z) + 0.5 : single EUP op, no exp overflow.
    o_ref[...] = 0.5 * jnp.tanh(0.5 * z) + 0.5


def prepare_rbm_params(w, b_h):
    """Cast/reshape the inference-constant RBM parameters once at model load."""
    V, H = w.shape
    return w.astype(jnp.bfloat16), b_h.reshape(1, H).astype(jnp.float32)


def qmodel_forward(x_nchw, w_bf, b2, *, max_tile_b=512):
    """x_nchw: (B, C, H, W) f32; w_bf: (V, H) bf16; b2: (1, H) f32 -> (B, H) f32."""
    B = x_nchw.shape[0]
    x_flat = x_nchw.reshape(B, -1)          # flatten NCHW -> (B, V); stays f32
    V, H = w_bf.shape
    assert x_flat.shape[1] == V

    # Generation-aware batch tiling:
    #   pad only to a 16-row boundary; one tile per TensorCore, capped at
    #   max_tile_b rows, so v5e/v6e run a single grid step while v7x keeps
    #   >=2 steps for its two cores.
    n_cores = _num_tensorcores()
    b16 = _round_up(B, 16)
    tb = min(max_tile_b, _round_up(-(-b16 // n_cores), 16))
    b_pad = _round_up(B, tb)
    if b_pad != B:
        x_flat = jnp.pad(x_flat, ((0, b_pad - B), (0, 0)))
    grid_b = b_pad // tb

    cost = pl.CostEstimate(
        flops=2 * b_pad * V * H,
        transcendentals=b_pad * H,
        bytes_accessed=4 * b_pad * V + 2 * V * H + 4 * H + 4 * b_pad * H,
    )

    out = pl.pallas_call(
        rbm_forward_kernel,
        out_shape=jax.ShapeDtypeStruct((b_pad, H), jnp.float32),
        grid=(grid_b,),
        in_specs=[
            pl.BlockSpec((tb, V), lambda i: (i, 0)),    # x tile: streamed per step
            pl.BlockSpec((V, H), lambda i: (0, 0)),     # W: VMEM-resident (const idx)
            pl.BlockSpec((1, H), lambda i: (0, 0)),     # bias: VMEM-resident
        ],
        out_specs=pl.BlockSpec((tb, H), lambda i: (i, 0)),
        compiler_params=pltpu.CompilerParams(
            dimension_semantics=("parallel",),          # v7x: 2 TCs split the batch
        ),
        cost_estimate=cost,
    )(x_flat, w_bf, b2)

    return out[:B]


def _ref_forward(x_nchw, w, b_h):
    # Plain-JAX reference using the same bf16-rounded operands, f32 math.
    B = x_nchw.shape[0]
    xb = x_nchw.reshape(B, -1).astype(jnp.bfloat16).astype(jnp.float32)
    wb = w.astype(jnp.bfloat16).astype(jnp.float32)
    return jax.nn.sigmoid(xb @ wb + b_h[None, :])


if __name__ == "__main__":
    key = jax.random.PRNGKey(0)
    kx, kw, kb = jax.random.split(key, 3)

    # Module-consistent small shapes: images of (4, 16, 16) -> n_visible = 1024,
    # n_hidden = 128.
    B, C, Hs, Ws = 2, 4, 16, 16
    n_visible = C * Hs * Ws
    n_hidden = 128

    x = jax.random.normal(kx, (B, C, Hs, Ws), dtype=jnp.float32)
    w = 0.01 * jax.random.normal(kw, (n_visible, n_hidden), dtype=jnp.float32)
    b_h = 0.1 * jax.random.normal(kb, (n_hidden,), dtype=jnp.float32)

    # Cast/reshape the parameters once (hoisted out of the per-call forward).
    w_bf, b2 = prepare_rbm_params(w, b_h)

    out = qmodel_forward(x, w_bf, b2)
    jax.block_until_ready(out)
    assert out.shape == (B, n_hidden)
    ref = _ref_forward(x, w, b_h)
    assert jnp.allclose(out, ref, atol=5e-3, rtol=5e-3)

    # Larger batch exercises the padding path and (on v7x) a 2-step parallel grid.
    B2 = 48
    x2 = jax.random.normal(jax.random.PRNGKey(1), (B2, C, Hs, Ws), dtype=jnp.float32)
    out2 = qmodel_forward(x2, w_bf, b2)
    jax.block_until_ready(out2)
    assert out2.shape == (B2, n_hidden)
    assert jnp.allclose(out2, _ref_forward(x2, w, b_h), atol=5e-3, rtol=5e-3)

    print("KERNEL_OK")
</pallas_src>

<mosaic_0001>
module attributes {stable_mosaic.version = 11 : i64} {
  func.func @rbm_forward_kernel(%arg0: i32, %arg1: memref<16x1024xf32, #tpu.memory_space<vmem>>, %arg2: memref<1024x128xbf16, #tpu.memory_space<vmem>>, %arg3: memref<1x128xf32, #tpu.memory_space<vmem>>, %arg4: memref<16x128xf32, #tpu.memory_space<vmem>>) attributes {dimension_semantics = [#tpu.dimension_semantics<parallel>], iteration_bounds = array<i64: 1>, scalar_prefetch = 0 : i64, scratch_operands = 0 : i64, tpu.core_type = #tpu.core_type<tc>, window_params = [{transform_indices = @transform_0, window_bounds = array<i64: 16, 1024>}, {pipeline_mode = #tpu.pipeline_mode<synchronous>, transform_indices = @transform_1, window_bounds = array<i64: 1024, 128>}, {pipeline_mode = #tpu.pipeline_mode<synchronous>, transform_indices = @transform_2, window_bounds = array<i64: 1, 128>}, {transform_indices = @transform_3, window_bounds = array<i64: 16, 128>}]} {
    %c0 = arith.constant 0 : index
    %c0_0 = arith.constant 0 : index
    %0 = vector.load %arg1[%c0, %c0_0] : memref<16x1024xf32, #tpu.memory_space<vmem>>, vector<16x1024xf32>
    %1 = arith.truncf %0 : vector<16x1024xf32> to vector<16x1024xbf16>
    %c0_1 = arith.constant 0 : index
    %c0_2 = arith.constant 0 : index
    %2 = vector.load %arg2[%c0_1, %c0_2] : memref<1024x128xbf16, #tpu.memory_space<vmem>>, vector<1024x128xbf16>
    %cst = arith.constant dense<0.000000e+00> : vector<16x128xf32>
    %3 = tpu.matmul %1, %2, %cst {dimension_numbers = #tpu.dot_dimension_numbers<[1], [0], [0], [1], [0, 0, 1, 1], [], []>} : vector<16x1024xbf16>, vector<1024x128xbf16>, vector<16x128xf32> -> vector<16x128xf32>
    %c0_3 = arith.constant 0 : index
    %c0_4 = arith.constant 0 : index
    %4 = vector.load %arg3[%c0_3, %c0_4] : memref<1x128xf32, #tpu.memory_space<vmem>>, vector<1x128xf32>
    %5 = vector.broadcast %4 : vector<1x128xf32> to vector<16x128xf32>
    %6 = arith.addf %3, %5 : vector<16x128xf32>
    %cst_5 = arith.constant 5.000000e-01 : f32
    %7 = vector.broadcast %cst_5 : f32 to vector<16x128xf32>
    %8 = arith.mulf %7, %6 : vector<16x128xf32>
    %9 = math.tanh %8 : vector<16x128xf32>
    %cst_6 = arith.constant 5.000000e-01 : f32
    %10 = vector.broadcast %cst_6 : f32 to vector<16x128xf32>
    %11 = arith.mulf %10, %9 : vector<16x128xf32>
    %cst_7 = arith.constant 5.000000e-01 : f32
    %12 = vector.broadcast %cst_7 : f32 to vector<16x128xf32>
    %13 = arith.addf %11, %12 : vector<16x128xf32>
    %c0_8 = arith.constant 0 : index
    %c0_9 = arith.constant 0 : index
    %14 = vector.load %arg4[%c0_8, %c0_9] : memref<16x128xf32, #tpu.memory_space<vmem>>, vector<16x128xf32>
    tpu.vector_store %arg4[%c0_8, %c0_9], %13 {strides = array<i32>} : memref<16x128xf32, #tpu.memory_space<vmem>>, vector<16x128xf32>,
    return
  }
  func.func @transform_0(%arg0: i32) -> (i32, i32) {
    %c0_i32 = arith.constant 0 : i32
    %c0_i32_0 = arith.constant 0 : i32
    return %arg0, %c0_i32 : i32, i32
  }
  func.func @transform_1(%arg0: i32) -> (i32, i32) {
    %c0_i32 = arith.constant 0 : i32
    %c0_i32_0 = arith.constant 0 : i32
    %c0_i32_1 = arith.constant 0 : i32
    return %c0_i32, %c0_i32_0 : i32, i32
  }
  func.func @transform_2(%arg0: i32) -> (i32, i32) {
    %c0_i32 = arith.constant 0 : i32
    %c0_i32_0 = arith.constant 0 : i32
    %c0_i32_1 = arith.constant 0 : i32
    return %c0_i32, %c0_i32_0 : i32, i32
  }
  func.func @transform_3(%arg0: i32) -> (i32, i32) {
    %c0_i32 = arith.constant 0 : i32
    %c0_i32_0 = arith.constant 0 : i32
    return %arg0, %c0_i32 : i32, i32
  }
}

</mosaic_0001>

<bundles_post_ra>
// kernel: tpu_custom_call.1
= control target key start
LH: loop header
LB: loop body
LE: loop exit
PB: predicated region body
PF: predicated region fallthrough
CT: control target
= control target key end

     0   :  { %8 = vsyncpa [#allocation3], 0  ;;  %s1147_s0 = inlined_call_operand.hbm [shape: f32[16,1024], index: 0, kind: input, shape index: {}]   ;;  %s1148_s1 = inlined_call_operand.hbm [shape: bf16[1024,128], index: 1, kind: input, shape index: {}]   ;;  %s1149_s2 = inlined_call_operand.vmem [shape: f32[1,128], index: 2, kind: input, shape index: {}]   ;;  %s1150_s3 = inlined_call_operand.hbm [shape: f32[16,128], index: 3, kind: output, shape index: {}]  }
   0x1   :  { %9 = vsyncpa [#allocation6], 0 }
   0x2   :  { %10 = vsyncpa [#allocation4], 0  ;;  %s1080_s12 = smov [#allocation2]   ;;  %s1008_s16 = scalar_lea.hbm %s1147_s0, 2048 }
   0x3   :  { %s16_s13 = sshll.u32 %s1080_s12, 4  ;;  %p1009_p0 = scmp.ne.s32.totalorder %s1147_s0, %s1008_s16  ;;  %s17_s13 = int_to_ptr.vmem [resolvable:$true] %s16_s13 }
   0x4   :  { %p1012_p1 = scmp.lt.u32.totalorder %s1008_s16, %s1147_s0 }
   0x6   :  { %p1014_p2 = pnand %p1012_p1, %p1009_p0 }
   0x8   :  { %1017 = shalt.err (!%p1014_p2)
}
   0x9   :  { %s1018_s21 = scalar_lea.vmem %s17_s13, 2048  ;;  %p1023_p4 = scmp.lt.s32.totalorder %s17_s13, %s17_s13 }
   0xa   :  { %p1019_p3 = scmp.ne.s32.totalorder %s17_s13, %s1018_s21  ;;  %p1024_p5 = scmp.lt.s32.totalorder %s1018_s21, %s1018_s21 }
   0xc   :  { %p1025_p6 = por %p1024_p5, %p1023_p4 }
   0xe   :  { %p1026_p7 = pnand %p1025_p6, %p1019_p3 }
  0x10   :  { %1029 = shalt.err (!%p1026_p7)
}
  0x11   :  { %s1081_s22 = smov 1024   ;;  %s1082_s23 = smov 64  }
  0x12   :  { %22 = dma.hbm_to_vmem [thread:$0]  %s1147_s0, 2048, %s17_s13, [#allocation3], %s1081_s22, %s1081_s22, %s1082_s23  }
  0x13   :  { %s1083_s26 = smov [#allocation5]   ;;  %s1030_s30 = scalar_lea.hbm %s1148_s1, 8192 }
  0x14   :  { %s28_s27 = sshll.u32 %s1083_s26, 4  ;;  %p1031_p8 = scmp.ne.s32.totalorder %s1148_s1, %s1030_s30  ;;  %s29_s27 = int_to_ptr.vmem [resolvable:$true] %s28_s27 }
  0x15   :  { %p1034_p9 = scmp.lt.u32.totalorder %s1030_s30, %s1148_s1 }
  0x17   :  { %p1036_p10 = pnand %p1034_p9, %p1031_p8 }
  0x19   :  { %1039 = shalt.err (!%p1036_p10)
}
  0x1a   :  { %s1040_s8 = scalar_lea.vmem %s29_s27, 8192  ;;  %p1045_p12 = scmp.lt.s32.totalorder %s29_s27, %s29_s27 }
  0x1b   :  { %p1041_p11 = scmp.ne.s32.totalorder %s29_s27, %s1040_s8  ;;  %p1046_p13 = scmp.lt.s32.totalorder %s1040_s8, %s1040_s8 }
  0x1d   :  { %p1047_p0 = por %p1046_p13, %p1045_p12 }
  0x1f   :  { %p1048_p1 = pnand %p1047_p0, %p1041_p11 }
  0x21   :  { %1051 = shalt.err (!%p1048_p1)
}
  0x22   :  { %s1084_s0 = smov 4  }
  0x23   :  { %34 = dma.hbm_to_vmem [thread:$0]  %s1148_s1, 8192, %s29_s27, [#allocation6], %s1082_s23, %s1082_s23, %s1084_s0  }
  0x24   :  { %1074 = dma.done.wait [#allocation3], 2048  }
  0x25   :  { %1075 = vsyncadd [#allocation3], 4294965248 }
  0x26   :  { %1076 = dma.done.wait [#allocation6], 8192  }
  0x27   :  { %1077 = vsyncadd [#allocation6], 4294959104  ;;  %v940_v0 = vld [vmem:[#allocation5 + $0x40] sm:$0xff]   ;;  %v944_v4 = vld [vmem:[#allocation5 + $0x48] sm:$0xff]  }
  0x28   :  { %v941_v1 = vld [vmem:[#allocation5 + $0xc0] sm:$0xff]   ;;  %844 = vmatprep.subr.bf16.mxu0 %v940_v0  ;;  %v945_v5 = vld [vmem:[#allocation5 + $0xc8] sm:$0xff]   ;;  %v948_v8 = vld [vmem:[#allocation5 + $0x50] sm:$0xff]  }
  0x29   :  { %v942_v2 = vld [vmem:[#allocation5] sm:$0xff]   ;;  %866 = vmatprep.subr.bf16.mxu1 %v941_v1  ;;  %v946_v6 = vld [vmem:[#allocation5 + $0x8] sm:$0xff]   ;;  %v949_v9 = vld [vmem:[#allocation5 + $0xd0] sm:$0xff]  }
  0x2a   :  { %v943_v3 = vld [vmem:[#allocation5 + $0x80] sm:$0xff]   ;;  %845 = vmatpush3.bf16.msra.mxu0 %v942_v2  ;;  %v947_v7 = vld [vmem:[#allocation5 + $0x88] sm:$0xff]   ;;  %v950_v10 = vld [vmem:[#allocation5 + $0x10] sm:$0xff]  }
  0x2b   :  { %867 = vmatpush3.bf16.msra.mxu1 %v943_v3  ;;  %846 = vmatprep.subr.bf16.mxu0 %v944_v4  ;;  %v951_v11 = vld [vmem:[#allocation5 + $0x90] sm:$0xff]   ;;  %v952_v12 = vld [vmem:[#allocation5 + $0x58] sm:$0xff]   ;;  %v956_v16 = vld [vmem:[#allocation5 + $0x60] sm:$0xff]  }
  0x2c   :  { %868 = vmatprep.subr.bf16.mxu1 %v945_v5  ;;  %v953_v13 = vld [vmem:[#allocation5 + $0xd8] sm:$0xff]   ;;  %v957_v17 = vld [vmem:[#allocation5 + $0xe0] sm:$0xff]   ;;  %v960_v20 = vld [vmem:[#allocation5 + $0x68] sm:$0xff]  }
  0x2d   :  { %v954_v14 = vld [vmem:[#allocation5 + $0x18] sm:$0xff]   ;;  %v958_v18 = vld [vmem:[#allocation5 + $0x20] sm:$0xff]   ;;  %v961_v21 = vld [vmem:[#allocation5 + $0xe8] sm:$0xff]  }
  0x2e   :  { %847 = vmatpush3.bf16.msra.mxu0 %v946_v6  ;;  %v955_v15 = vld [vmem:[#allocation5 + $0x98] sm:$0xff]   ;;  %v959_v19 = vld [vmem:[#allocation5 + $0xa0] sm:$0xff]   ;;  %v962_v22 = vld [vmem:[#allocation5 + $0x28] sm:$0xff]  }
  0x2f   :  { %869 = vmatpush3.bf16.msra.mxu1 %v947_v7  ;;  %848 = vmatprep.subr.bf16.mxu0 %v948_v8  ;;  %v963_v23 = vld [vmem:[#allocation5 + $0xa8] sm:$0xff]   ;;  %v964_v24 = vld [vmem:[#allocation5 + $0x70] sm:$0xff]   ;;  %v968_v28 = vld [vmem:[#allocation5 + $0x78] sm:$0xff]  }
  0x30   :  { %870 = vmatprep.subr.bf16.mxu1 %v949_v9  ;;  %v965_v25 = vld [vmem:[#allocation5 + $0xf0] sm:$0xff]   ;;  %v969_v29 = vld [vmem:[#allocation5 + $0xf8] sm:$0xff]   ;;  %v45_v32 = vld [vmem:[#allocation2 + $0x8] sm:$0xff] }
  0x31   :  { %v966_v26 = vld [vmem:[#allocation5 + $0x30] sm:$0xff]   ;;  %v970_v30 = vld [vmem:[#allocation5 + $0x38] sm:$0xff]   ;;  %v53_v33 = vld [vmem:[#allocation2 + $0x48] sm:$0xff] }
  0x32   :  { %849 = vmatpush3.bf16.msra.mxu0 %v950_v10  ;;  %v967_v27 = vld [vmem:[#allocation5 + $0xb0] sm:$0xff]   ;;  %v971_v31 = vld [vmem:[#allocation5 + $0xb8] sm:$0xff]   ;;  %v61_v35 = vpack.c.bf16 %v53_v33, %v45_v32  ;;  %v44_v37 = vld [vmem:[#allocation2] sm:$0xff] }
  0x33   :  { %871 = vmatpush3.bf16.msra.mxu1 %v951_v11  ;;  %850 = vmatprep.subr.bf16.mxu0 %v952_v12  ;;  %v47_v34 = vld [vmem:[#allocation2 + $0x18] sm:$0xff]  ;;  %v52_v38 = vld [vmem:[#allocation2 + $0x40] sm:$0xff]  ;;  %v46_v41 = vld [vmem:[#allocation2 + $0x10] sm:$0xff] }
  0x34   :  { %872 = vmatprep.subr.bf16.mxu1 %v953_v13  ;;  %v55_v36 = vld [vmem:[#allocation2 + $0x58] sm:$0xff]  ;;  %v60_v40 = vpack.c.bf16 %v52_v38, %v44_v37  ;;  %v54_v42 = vld [vmem:[#allocation2 + $0x50] sm:$0xff]  ;;  %619 = vmatprep.mubr.bf16.mxu0 %v61_v35  ;;  %v972_v44 = vld [vmem:[#allocation5 + $0x140] sm:$0xff]  }
  0x35   :  { %v63_v39 = vpack.c.bf16 %v55_v36, %v47_v34  ;;  %v62_v43 = vpack.c.bf16 %v54_v42, %v46_v41  ;;  %v973_v45 = vld [vmem:[#allocation5 + $0x1c0] sm:$0xff]   ;;  %v976_v48 = vld [vmem:[#allocation5 + $0x148] sm:$0xff]   ;;  %v980_v52 = vld [vmem:[#allocation5 + $0x150] sm:$0xff]  }
  0x36   :  { %851 = vmatpush3.bf16.msra.mxu0 %v954_v14  ;;  %v974_v46 = vld [vmem:[#allocation5 + $0x100] sm:$0xff]   ;;  %v977_v49 = vld [vmem:[#allocation5 + $0x1c8] sm:$0xff]   ;;  %v981_v53 = vld [vmem:[#allocation5 + $0x1d0] sm:$0xff]  }
  0x37   :  { %873 = vmatpush3.bf16.msra.mxu1 %v955_v15  ;;  %852 = vmatprep.subr.bf16.mxu0 %v956_v16  ;;  %v975_v47 = vld [vmem:[#allocation5 + $0x180] sm:$0xff]   ;;  %v978_v50 = vld [vmem:[#allocation5 + $0x108] sm:$0xff]   ;;  %v982_v54 = vld [vmem:[#allocation5 + $0x110] sm:$0xff]  }
  0x38   :  { %874 = vmatprep.subr.bf16.mxu1 %v957_v17  ;;  %660 = vmatprep.mubr.bf16.mxu1 %v63_v39  ;;  %v979_v51 = vld [vmem:[#allocation5 + $0x188] sm:$0xff]   ;;  %v983_v55 = vld [vmem:[#allocation5 + $0x190] sm:$0xff]   ;;  %v984_v56 = vld [vmem:[#allocation5 + $0x158] sm:$0xff]  }
  0x39   :  { %v985_v57 = vld [vmem:[#allocation5 + $0x1d8] sm:$0xff]   ;;  %v988_v60 = vld [vmem:[#allocation5 + $0x160] sm:$0xff]   ;;  %v992_v0 = vld [vmem:[#allocation5 + $0x168] sm:$0xff]  }
  0x3a   :  { %853 = vmatpush3.bf16.msra.mxu0 %v958_v18  ;;  %v986_v58 = vld [vmem:[#allocation5 + $0x118] sm:$0xff]   ;;  %v989_v61 = vld [vmem:[#allocation5 + $0x1e0] sm:$0xff]   ;;  %v993_v1 = vld [vmem:[#allocation5 + $0x1e8] sm:$0xff]  }
  0x3b   :  { %875 = vmatpush3.bf16.msra.mxu1 %v959_v19  ;;  %854 = vmatprep.subr.bf16.mxu0 %v960_v20  ;;  %v987_v59 = vld [vmem:[#allocation5 + $0x198] sm:$0xff]   ;;  %v990_v62 = vld [vmem:[#allocation5 + $0x120] sm:$0xff]   ;;  %v994_v2 = vld [vmem:[#allocation5 + $0x128] sm:$0xff]  }
  0x3c   :  { %876 = vmatprep.subr.bf16.mxu1 %v961_v21  ;;  %v991_v63 = vld [vmem:[#allocation5 + $0x1a0] sm:$0xff]   ;;  %v995_v3 = vld [vmem:[#allocation5 + $0x1a8] sm:$0xff]   ;;  %v996_v4 = vld [vmem:[#allocation5 + $0x170] sm:$0xff]  }
  0x3d   :  { %v997_v5 = vld [vmem:[#allocation5 + $0x1f0] sm:$0xff]   ;;  %v1000_v8 = vld [vmem:[#allocation5 + $0x178] sm:$0xff]   ;;  %v49_v12 = vld [vmem:[#allocation2 + $0x28] sm:$0xff] }
  0x3e   :  { %855 = vmatpush3.bf16.msra.mxu0 %v962_v22  ;;  %v998_v6 = vld [vmem:[#allocation5 + $0x130] sm:$0xff]   ;;  %v1001_v9 = vld [vmem:[#allocation5 + $0x1f8] sm:$0xff]   ;;  %v57_v13 = vld [vmem:[#allocation2 + $0x68] sm:$0xff] }
  0x3f   :  { %877 = vmatpush3.bf16.msra.mxu1 %v963_v23  ;;  %856 = vmatprep.subr.bf16.mxu0 %v964_v24  ;;  %v999_v7 = vld [vmem:[#allocation5 + $0x1b0] sm:$0xff]   ;;  %v1002_v10 = vld [vmem:[#allocation5 + $0x138] sm:$0xff]   ;;  %v65_v16 = vpack.c.bf16 %v57_v13, %v49_v12  ;;  %v48_v18 = vld [vmem:[#allocation2 + $0x20] sm:$0xff] }
  0x40   :  { %878 = vmatprep.subr.bf16.mxu1 %v965_v25  ;;  %v1003_v11 = vld [vmem:[#allocation5 + $0x1b8] sm:$0xff]   ;;  %v56_v19 = vld [vmem:[#allocation2 + $0x60] sm:$0xff]  ;;  %v50_v20 = vld [vmem:[#allocation2 + $0x30] sm:$0xff] }
  0x41   :  { %v51_v14 = vld [vmem:[#allocation2 + $0x38] sm:$0xff]  ;;  %v64_v21 = vpack.c.bf16 %v56_v19, %v48_v18  ;;  %v58_v22 = vld [vmem:[#allocation2 + $0x70] sm:$0xff] }
  0x42   :  { %857 = vmatpush3.bf16.msra.mxu0 %v966_v26  ;;  %v59_v15 = vld [vmem:[#allocation2 + $0x78] sm:$0xff]  ;;  %v66_v23 = vpack.c.bf16 %v58_v22, %v50_v20  ;;  %v779_v26 = vld [vmem:[%s1149_s2] ss:$0 sm:$0xff]  ;;  %s1085_s2 = smov [#allocation7]  }
  0x43   :  { %879 = vmatpush3.bf16.msra.mxu1 %v967_v27  ;;  %858 = vmatprep.subr.bf16.mxu0 %v968_v28  ;;  %v67_v17 = vpack.c.bf16 %v59_v15, %v51_v14  ;;  %s766_s12 = sshll.u32 %s1085_s2, 4  ;;  %s767_s12 = int_to_ptr.vmem [resolvable:$true] %s766_s12 }
  0x44   :  { %880 = vmatprep.subr.bf16.mxu1 %v969_v29  ;;  %s1052_s13 = scalar_lea.vmem %s767_s12, 256  ;;  %p1057_p3 = scmp.lt.s32.totalorder %s767_s12, %s767_s12 }
  0x45   :  { %p1053_p2 = scmp.ne.s32.totalorder %s767_s12, %s1052_s13  ;;  %p1058_p4 = scmp.lt.s32.totalorder %s1052_s13, %s1052_s13 }
  0x46   :  { %859 = vmatpush3.bf16.msra.mxu0 %v970_v30 }
  0x47   :  { %881 = vmatpush3.bf16.msra.mxu1 %v971_v31  ;;  %888 = vmatprep.subr.bf16.mxu0 %v972_v44  ;;  %p1059_p5 = por %p1058_p4, %p1057_p3 }
  0x48   :  { %910 = vmatprep.subr.bf16.mxu1 %v973_v45 }
  0x49   :  { %620 = vmatmul.mubr.bf16.vlgmr.msra.gmra.mrb[0].mxu0 %v60_v40  ;;  %p1060_p6 = pnand %p1059_p5, %p1053_p2 }
  0x4a   :  { %661 = vmatmul.mubr.bf16.vlgmr.msra.gmra.mrb[0].mxu1 %v62_v43  ;;  %889 = vmatpush3.bf16.msra.mxu0 %v974_v46 }
  0x4b   :  { %911 = vmatpush3.bf16.msra.mxu1 %v975_v47  ;;  %890 = vmatprep.subr.bf16.mxu0 %v976_v48 }
  0x4c   :  { %912 = vmatprep.subr.bf16.mxu1 %v977_v49  ;;  %701 = vmatprep.mubr.bf16.mxu0 %v65_v16 }
  0x4d   :  { %742 = vmatprep.mubr.bf16.mxu1 %v67_v17 }
  0x4e   :  { %891 = vmatpush3.bf16.msra.mxu0 %v978_v50 }
  0x4f   :  { %913 = vmatpush3.bf16.msra.mxu1 %v979_v51  ;;  %892 = vmatprep.subr.bf16.mxu0 %v980_v52 }
  0x50   :  { %914 = vmatprep.subr.bf16.mxu1 %v981_v53 }
  0x52   :  { %893 = vmatpush3.bf16.msra.mxu0 %v982_v54 }
  0x53   :  { %915 = vmatpush3.bf16.msra.mxu1 %v983_v55  ;;  %894 = vmatprep.subr.bf16.mxu0 %v984_v56 }
  0x54   :  { %916 = vmatprep.subr.bf16.mxu1 %v985_v57 }
  0x56   :  { %895 = vmatpush3.bf16.msra.mxu0 %v986_v58 }
  0x57   :  { %917 = vmatpush3.bf16.msra.mxu1 %v987_v59  ;;  %896 = vmatprep.subr.bf16.mxu0 %v988_v60 }
  0x58   :  { %918 = vmatprep.subr.bf16.mxu1 %v989_v61 }
  0x5a   :  { %897 = vmatpush3.bf16.msra.mxu0 %v990_v62 }
  0x5b   :  { %919 = vmatpush3.bf16.msra.mxu1 %v991_v63  ;;  %898 = vmatprep.subr.bf16.mxu0 %v992_v0 }
  0x5c   :  { %920 = vmatprep.subr.bf16.mxu1 %v993_v1 }
  0x5e   :  { %899 = vmatpush3.bf16.msra.mxu0 %v994_v2 }
  0x5f   :  { %921 = vmatpush3.bf16.msra.mxu1 %v995_v3  ;;  %900 = vmatprep.subr.bf16.mxu0 %v996_v4 }
  0x60   :  { %922 = vmatprep.subr.bf16.mxu1 %v997_v5 }
  0x62   :  { %901 = vmatpush3.bf16.msra.mxu0 %v998_v6 }
  0x63   :  { %923 = vmatpush3.bf16.msra.mxu1 %v999_v7  ;;  %902 = vmatprep.subr.bf16.mxu0 %v1000_v8 }
  0x64   :  { %924 = vmatprep.subr.bf16.mxu1 %v1001_v9 }
  0x66   :  { %903 = vmatpush3.bf16.msra.mxu0 %v1002_v10 }
  0x67   :  { %925 = vmatpush3.bf16.msra.mxu1 %v1003_v11 }
  0x69   :  { %702 = vmatmul.mubr.bf16.vlgmr.msra.gmra.mrb[4].mxu0 %v64_v21 }
  0x6a   :  { %743 = vmatmul.mubr.bf16.vlgmr.msra.gmra.mrb[4].mxu1 %v66_v23 }
 0x11c   :  { %v860_v24 = vpop.f32.mrb[0].mxu0 }
 0x11d   :  { %v882_v25 = vpop.f32.mrb[0].mxu1  ;;  %v861_v27 = vpop.f32.mrb[1].mxu0 }
 0x11e   :  { %v862_v28 = vadd.f32 %v861_v27, %v860_v24  ;;  %v883_v29 = vpop.f32.mrb[1].mxu1  ;;  %v863_v30 = vpop.f32.mrb[2].mxu0 }
 0x11f   :  { %v884_v31 = vadd.f32 %v883_v29, %v882_v25  ;;  %v885_v32 = vpop.f32.mrb[2].mxu1  ;;  %v864_v33 = vpop.f32.mrb[3].mxu0 }
 0x120   :  { %v622_v34 = vadd.f32 %v862_v28, %v779_v26  ;;  %v865_v35 = vadd.f32 %v864_v33, %v863_v30  ;;  %v886_v36 = vpop.f32.mrb[3].mxu1 }
 0x121   :  { %v887_v37 = vadd.f32 %v886_v36, %v885_v32 }
 0x122   :  { %v663_v38 = vadd.f32 %v884_v31, %v622_v34  ;;  %v625_v39 = vadd.f32 %v865_v35, %v779_v26 }
 0x124   :  { %v666_v40 = vadd.f32 %v887_v37, %v625_v39 }
 0x13c   :  { %v904_v41 = vpop.f32.mrb[4].mxu0 }
 0x13d   :  { %v926_v42 = vpop.f32.mrb[4].mxu1  ;;  %v905_v43 = vpop.f32.mrb[5].mxu0 }
 0x13e   :  { %v906_v44 = vadd.f32 %v905_v43, %v904_v41  ;;  %v927_v45 = vpop.f32.mrb[5].mxu1  ;;  %v907_v46 = vpop.f32.mrb[6].mxu0 }
 0x13f   :  { %v928_v47 = vadd.f32 %v927_v45, %v926_v42  ;;  %v929_v48 = vpop.f32.mrb[6].mxu1  ;;  %v908_v49 = vpop.f32.mrb[7].mxu0 }
 0x140   :  { %v704_v50 = vadd.f32 %v906_v44, %v663_v38  ;;  %v909_v51 = vadd.f32 %v908_v49, %v907_v46  ;;  %v930_v52 = vpop.f32.mrb[7].mxu1 }
 0x141   :  { %v931_v53 = vadd.f32 %v930_v52, %v929_v48 }
 0x142   :  { %v745_v54 = vadd.f32 %v928_v47, %v704_v50  ;;  %v707_v55 = vadd.f32 %v909_v51, %v666_v40 }
 0x144   :  { %v751_v56 = vmul.f32 0.5, %v745_v54  ;;  %v748_v57 = vadd.f32 %v931_v53, %v707_v55 }
 0x146   :  { %1004 = vtanh.f32 %v751_v56  ;;  %v752_v58 = vmul.f32 0.5, %v748_v57 }
 0x148   :  { %1006 = vtanh.f32 %v752_v58 }
 0x150   :  { %v1005_v59 = vpop.eup %1004 }
 0x151   :  { %v755_v60 = vmul.f32 0.5, %v1005_v59 }
 0x152   :  { %v1007_v61 = vpop.eup %1006 }
 0x153   :  { %v757_v62 = vadd.f32 0.5, %v755_v60  ;;  %v756_v63 = vmul.f32 0.5, %v1007_v61 }
 0x155   :  { %759 = vst [vmem:[#allocation7] sm:$0xff] %v757_v62  ;;  %v758_v0 = vadd.f32 0.5, %v756_v63 }
 0x157   :  { %760 = vst [vmem:[#allocation7 + $0x8] sm:$0xff] %v758_v0 }
 0x158   :  { %1063 = shalt.err (!%p1060_p6)
}
 0x159   :  { %s1064_s16 = scalar_lea.hbm %s1150_s3, 256 }
 0x15a   :  { %p1065_p7 = scmp.ne.s32.totalorder %s1150_s3, %s1064_s16  ;;  %p1068_p8 = scmp.lt.u32.totalorder %s1064_s16, %s1150_s3 }
 0x15c   :  { %p1070_p9 = pnand %p1068_p8, %p1065_p7 }
 0x15e   :  { %1073 = shalt.err (!%p1070_p9)
}
 0x15f   :  { %s1086_s21 = smov 128   ;;  %s1087_s22 = smov 8  }
 0x160   :  { %772 = dma.vmem_to_hbm [thread:$0]  %s767_s12, 256, %s1150_s3, [#allocation4], %s1086_s21, %s1086_s21, %s1087_s22  }
 0x161   :  { %1078 = dma.done.wait [#allocation4], 256  }
 0x162   :  { %1079 = vsyncadd [#allocation4], 4294967040 }
 0x163   :  { %776 = vsyncpa [#allocation3], 1 }
 0x164   :  { %777 = vsyncpa [#allocation6], 1 }
 0x165   :  { %778 = vsyncpa [#allocation4], 1 }

</bundles_post_ra>
